<compile_context>
chip_gen: v6e
topology: v6e:2x2x1
jax: 0.10.0
libtpu: 0.0.40
codegen_flags: <defaults>
</compile_context>

<pallas_src>
import functools

import jax
import jax.numpy as jnp
from jax.experimental import pallas as pl
from jax.experimental.pallas import tpu as pltpu


# ----------------------------------------------------------------------------
# Small helpers
# ----------------------------------------------------------------------------
def _round_up(n, m):
    return (n + m - 1) // m * m


def _vmem_capacity_bytes():
    """(capacity_bytes, detected?) - conservative 64 MiB (v7x per-TC) fallback."""
    try:
        info = pltpu.get_tpu_info()
        cap = int(getattr(info, "vmem_capacity_bytes", 0) or 0)
        if cap > 0:
            return cap, True
    except Exception:
        pass
    return 64 << 20, False


def _const_spec(shape, index_map, buffers):
    """BlockSpec for a resident (constant-index) operand.

    On VMEM-tight parts (v7x) request a single buffer so the weights are not
    double-buffered; fall back to a plain spec if the API is unavailable.
    """
    if buffers == 1:
        try:
            return pl.BlockSpec(shape, index_map, pipeline_mode=pl.Buffered(1))
        except Exception:
            pass
    return pl.BlockSpec(shape, index_map)


def _choose_tm(M, per_row_bytes, budget_bytes, tm_max):
    tm = max(8, min(1024, int(tm_max)))
    while tm > 64 and tm * per_row_bytes > budget_bytes:
        tm //= 2
    tm = max(8, min(tm, _round_up(M, 8)))
    # v7x megacore: prefer an even number of row tiles so "parallel" splits evenly
    # across the 2 TensorCores (no-op on v5e/v6e).
    n = pl.cdiv(M, tm)
    if n > 1 and n % 2 == 1:
        tm = max(8, _round_up(pl.cdiv(M, n + 1), 8))
    return tm


def bn_fold(gamma, beta, mean, var, eps=1e-5):
    scale = gamma / jnp.sqrt(var + eps)
    shift = beta - mean * scale
    return scale, shift


# ----------------------------------------------------------------------------
# The fused stem kernel: three chained matmuls with affine+ReLU epilogues.
#   x_ref : (tm, 49*cin + 3) bf16   super-patches + border indicators
#   w1    : (49*cin + 3, 9*c1 + 3)  stage-1 conv (block-sparse, BN scale folded)
#   w2    : (9*c1 + 3, c2)          stage-2 conv + border-correction rows
#   w3    : (c2, E)                 1x1 conv
# ----------------------------------------------------------------------------
def _stem_fused_kernel(x_ref, w1_ref, b1_ref, w2_ref, b2_ref, w3_ref, b3_ref,
                       o_ref, *, n3_chunk):
    # Stage 1: emits the nine stage-2 taps of y1 at once (K<=256 -> one MXU pass);
    # the trailing 3 columns are the border indicators passed through unchanged
    # (their shift is 0 and they are >= 0, so ReLU is the identity on them).
    y1 = jnp.dot(x_ref[...], w1_ref[...], preferred_element_type=jnp.float32)
    y1 = jnp.maximum(y1 + b1_ref[...], 0.0)

    # Stage 2: 3x3/s2 conv as a matmul over the 9*c1 (+3 correction) K axis.  The
    # last 3 K-rows of w2 apply the exact zero-padding correction for pixels on the
    # top row / left column of the 4x-downsampled grid.
    y2 = jnp.dot(y1.astype(w2_ref.dtype), w2_ref[...],
                 preferred_element_type=jnp.float32)
    y2 = jnp.maximum(y2 + b2_ref[...], 0.0).astype(w3_ref.dtype)

    # Stage 3: 1x1 conv + bias, chunked over N so the f32 accumulator live range
    # stays bounded (v5e store-slot / spill discipline); stores go straight to o_ref.
    n3 = o_ref.shape[-1]
    for j in range(0, n3, n3_chunk):
        sz = min(n3_chunk, n3 - j)
        acc = jnp.dot(y2, w3_ref[:, j:j + sz], preferred_element_type=jnp.float32)
        o_ref[:, j:j + sz] = (acc + b3_ref[:, j:j + sz]).astype(o_ref.dtype)


def _stem_fused(xin, w1, b1, w2, b2, w3, b3, *, tm_max, out_dtype=jnp.bfloat16):
    M, K1 = xin.shape
    N1 = w1.shape[1]
    C2 = w2.shape[1]
    E = w3.shape[1]
    out_bytes = jnp.dtype(out_dtype).itemsize
    n3_chunk = min(512, E)

    cap, cap_known = _vmem_capacity_bytes()
    w_buffers = 1 if (cap_known and cap <= (96 << 20)) else 2

    resident = w_buffers * 2 * (K1 * N1 + N1 * C2 + C2 * E) + 4 * (N1 + C2 + E)
    per_row = (2 * 2 * K1 + 2 * out_bytes * E          # double-buffered LHS + out
               + 4 * N1 + 4 * C2 + 4 * n3_chunk        # f32 intermediates
               + 2 * N1 + 2 * C2)                      # bf16 copies feeding the MXU
    # ~13 MiB/step on v7x (64 MiB/TC), ~22-28 MiB/step on v5e/v6e (128 MiB).
    budget = max(4 << 20, min(int(0.25 * cap), 28 << 20) - resident)
    tm = _choose_tm(M, per_row, budget, tm_max)
    grid = (pl.cdiv(M, tm),)

    working_set = resident + tm * per_row
    vmem_limit = int(min(max(working_set + (8 << 20), 16 << 20), 0.5 * cap))

    cost = pl.CostEstimate(
        flops=2 * M * (K1 * N1 + N1 * C2 + C2 * E),
        transcendentals=0,
        bytes_accessed=(M * K1 * 2 + 2 * (K1 * N1 + N1 * C2 + C2 * E)
                        + 4 * (N1 + C2 + E) + M * E * out_bytes))

    const = lambda i: (0, 0)
    return pl.pallas_call(
        functools.partial(_stem_fused_kernel, n3_chunk=n3_chunk),
        out_shape=jax.ShapeDtypeStruct((M, E), out_dtype),
        grid=grid,
        in_specs=[
            pl.BlockSpec((tm, K1), lambda i: (i, 0)),
            _const_spec((K1, N1), const, w_buffers),
            _const_spec((1, N1), const, w_buffers),
            _const_spec((N1, C2), const, w_buffers),
            _const_spec((1, C2), const, w_buffers),
            _const_spec((C2, E), const, w_buffers),
            _const_spec((1, E), const, w_buffers),
        ],
        out_specs=pl.BlockSpec((tm, E), lambda i: (i, 0)),
        compiler_params=pltpu.CompilerParams(
            dimension_semantics=("parallel",),
            vmem_limit_bytes=vmem_limit),
        cost_estimate=cost,
    )(xin, w1, b1, w2, b2, w3, b3)


# ----------------------------------------------------------------------------
# Trace-time weight preparation: fold eval-mode BN + border corrections into the
# three matmul operands.  All folds done in f32, then cast to bf16 once.
# ----------------------------------------------------------------------------
def _prep_weights(params):
    c1, cin = params["conv1_w"].shape[0], params["conv1_w"].shape[1]
    c2 = params["conv2_w"].shape[0]
    e = params["conv3_w"].shape[0]

    s1, t1 = bn_fold(params["bn1_gamma"], params["bn1_beta"],
                     params["bn1_mean"], params["bn1_var"])
    s2, t2 = bn_fold(params["bn2_gamma"], params["bn2_beta"],
                     params["bn2_mean"], params["bn2_var"])

    # ---- stage 1 as a block-sparse (49*cin + 3, 9*c1 + 3) matrix -------------
    # Super-patch entry (di, dj, c) feeds stage-2 tap (ds, du) output channel co
    # with weight W1[kh, kw, c, co] where (kh, kw) = (di - 2*ds, dj - 2*du).
    w1 = jnp.transpose(params["conv1_w"], (2, 3, 1, 0)).astype(jnp.float32)
    w1 = w1 * s1[None, None, None, :]                       # fold BN scale
    k1, n1 = 49 * cin + 3, 9 * c1 + 3
    w1_big = jnp.zeros((k1, n1), jnp.float32)
    for ds in range(3):
        for du in range(3):
            col0 = (ds * 3 + du) * c1
            for kh in range(3):
                for kw in range(3):
                    di, dj = 2 * ds + kh, 2 * du + kw
                    r0 = (di * 7 + dj) * cin
                    w1_big = w1_big.at[r0:r0 + cin, col0:col0 + c1].set(w1[kh, kw])
    for p in range(3):                                      # indicator pass-through
        w1_big = w1_big.at[49 * cin + p, 9 * c1 + p].set(1.0)
    shift1 = jnp.concatenate([jnp.tile(t1, 9),
                              jnp.zeros((3,), jnp.float32)]).reshape(1, n1)

    # ---- stage 2 matrix + exact zero-padding correction rows -----------------
    # Out-of-bounds taps evaluate to relu(shift1) instead of 0 (y1 padding); the
    # three correction rows (selected by the indicator columns) subtract exactly
    # that contribution for top-row / left-column / corner output pixels.
    w2 = jnp.transpose(params["conv2_w"], (2, 3, 1, 0)).astype(jnp.float32)
    rs1 = jnp.maximum(t1, 0.0)
    ctop = jnp.einsum("c,wcd->d", rs1, w2[0])
    cleft = jnp.einsum("c,hcd->d", rs1, w2[:, 0])
    ccorn = jnp.einsum("c,cd->d", rs1, w2[0, 0])
    corr = jnp.stack([-ctop, -cleft, ccorn], axis=0)        # (3, c2)
    w2_mat = jnp.concatenate([w2.reshape(9 * c1, c2), corr], axis=0)
    w2_mat = w2_mat * s2[None, :]                           # fold BN scale
    shift2 = t2.reshape(1, c2).astype(jnp.float32)

    # ---- stage 3 (1x1 conv + bias) -------------------------------------------
    w3 = params["conv3_w"][:, :, 0, 0].T.astype(jnp.float32)   # (c2, E)
    b3 = params["conv3_b"].reshape(1, e).astype(jnp.float32)

    return (w1_big.astype(jnp.bfloat16), shift1,
            w2_mat.astype(jnp.bfloat16), shift2,
            w3.astype(jnp.bfloat16), b3)


# ----------------------------------------------------------------------------
# ConvStem forward.
# ----------------------------------------------------------------------------
def conv_stem_forward(x_nchw, params, *, tm_max=1024):
    e = params["conv3_w"].shape[0]
    B, C, H, W = x_nchw.shape
    assert H % 4 == 0 and W % 4 == 0, (H, W)
    assert C == params["conv1_w"].shape[1]
    ho, wo = H // 4, W // 4

    w1_big, shift1, w2_mat, shift2, w3, b3 = _prep_weights(params)

    # Single NCHW -> NHWC transpose + bf16 cast.
    x = jnp.transpose(x_nchw, (0, 2, 3, 1)).astype(jnp.bfloat16)

    # 7x7 / stride-4 super-patches: the combined receptive field of both 3x3/s2
    # convs (stage-1 pad handled by the zero pad of x; stage-2 pad by the
    # indicator/correction mechanism).
    xq = jnp.pad(x, ((0, 0), (3, 1), (3, 1), (0, 0)))
    cols = []
    for di in range(7):
        for dj in range(7):
            cols.append(xq[:, di:di + 4 * ho:4, dj:dj + 4 * wo:4, :])
    sp = jnp.concatenate(cols, axis=-1).reshape(B * ho * wo, 49 * C)

    # Border indicators [top-row, left-col, corner] per 4x-downsampled pixel.
    a = (jnp.arange(ho) == 0).astype(jnp.bfloat16)[:, None] \
        * jnp.ones((1, wo), jnp.bfloat16)
    b = jnp.ones((ho, 1), jnp.bfloat16) \
        * (jnp.arange(wo) == 0).astype(jnp.bfloat16)[None, :]
    ind = jnp.stack([a, b, a * b], axis=-1)
    ind = jnp.broadcast_to(ind[None], (B, ho, wo, 3)).reshape(B * ho * wo, 3)

    xin = jnp.concatenate([sp, ind], axis=-1)               # (M, 49*C + 3) bf16
    y = _stem_fused(xin, w1_big, shift1, w2_mat, shift2, w3, b3, tm_max=tm_max)

    # flatten(2).transpose(1,2) on NCHW == reshape (B, Ho*Wo, E) in NHWC.
    return y.reshape(B, ho * wo, e)                         # bf16; norm = Identity


# ----------------------------------------------------------------------------
# Deterministic parameters + pure-JAX reference + example run.
# ----------------------------------------------------------------------------
def make_params(key, embed_dim=32, in_chans=3):
    c1 = embed_dim // 8
    c2 = embed_dim // 4
    ks = jax.random.split(key, 8)
    return {
        "conv1_w": 0.1 * jax.random.normal(ks[0], (c1, in_chans, 3, 3), jnp.float32),
        "bn1_gamma": 1.0 + 0.1 * jax.random.normal(ks[1], (c1,), jnp.float32),
        "bn1_beta": 0.1 * jax.random.normal(ks[2], (c1,), jnp.float32),
        "bn1_mean": 0.05 * jax.random.normal(ks[3], (c1,), jnp.float32),
        "bn1_var": 1.0 + 0.1 * jax.random.uniform(ks[3], (c1,), jnp.float32),
        "conv2_w": 0.1 * jax.random.normal(ks[4], (c2, c1, 3, 3), jnp.float32),
        "bn2_gamma": 1.0 + 0.1 * jax.random.normal(ks[5], (c2,), jnp.float32),
        "bn2_beta": 0.1 * jax.random.normal(ks[6], (c2,), jnp.float32),
        "bn2_mean": 0.05 * jax.random.normal(ks[6], (c2,), jnp.float32),
        "bn2_var": 1.0 + 0.1 * jax.random.uniform(ks[5], (c2,), jnp.float32),
        "conv3_w": 0.1 * jax.random.normal(ks[7], (embed_dim, c2, 1, 1), jnp.float32),
        "conv3_b": 0.01 * jnp.arange(embed_dim, dtype=jnp.float32),
    }


def _reference_forward(x_nchw, params):
    def conv(x, w, stride, pad):
        return jax.lax.conv_general_dilated(
            x, w, (stride, stride), [(pad, pad), (pad, pad)],
            dimension_numbers=("NCHW", "OIHW", "NCHW"))

    def bn(x, g, b, m, v, eps=1e-5):
        g, b, m, v = (a.reshape(1, -1, 1, 1) for a in (g, b, m, v))
        return (x - m) / jnp.sqrt(v + eps) * g + b

    y = jnp.maximum(bn(conv(x_nchw, params["conv1_w"], 2, 1),
                       params["bn1_gamma"], params["bn1_beta"],
                       params["bn1_mean"], params["bn1_var"]), 0.0)
    y = jnp.maximum(bn(conv(y, params["conv2_w"], 2, 1),
                       params["bn2_gamma"], params["bn2_beta"],
                       params["bn2_mean"], params["bn2_var"]), 0.0)
    y = conv(y, params["conv3_w"], 1, 0) + params["conv3_b"].reshape(1, -1, 1, 1)
    B, C, H, W = y.shape
    return jnp.transpose(y.reshape(B, C, H * W), (0, 2, 1))


if __name__ == "__main__":
    key = jax.random.PRNGKey(0)
    kx, kp = jax.random.split(key)

    B, C, H, W = 2, 3, 16, 16        # in_chans is hardcoded to 3 in the module
    embed_dim = 32                   # embed_dim % 8 == 0
    x = jax.random.normal(kx, (B, C, H, W), jnp.float32)
    params = make_params(kp, embed_dim=embed_dim, in_chans=C)

    # Small row tile so the toy problem exercises a multi-step pipelined grid.
    fwd = jax.jit(functools.partial(conv_stem_forward, tm_max=16))
    out = jax.block_until_ready(fwd(x, params))
    assert out.shape == (B, (H // 4) * (W // 4), embed_dim), out.shape

    ref = _reference_forward(x, params)
    err = float(jnp.max(jnp.abs(out.astype(jnp.float32) - ref)))
    assert err < 5e-2, err

    print("KERNEL_OK")
</pallas_src>

<mosaic_0001>
module attributes {stable_mosaic.version = 11 : i64} {
  func.func @_stem_fused_kernel(%arg0: i32, %arg1: memref<16x150xbf16, #tpu.memory_space<vmem>>, %arg2: memref<150x39xbf16, #tpu.memory_space<vmem>>, %arg3: memref<1x39xf32, #tpu.memory_space<vmem>>, %arg4: memref<39x8xbf16, #tpu.memory_space<vmem>>, %arg5: memref<1x8xf32, #tpu.memory_space<vmem>>, %arg6: memref<8x32xbf16, #tpu.memory_space<vmem>>, %arg7: memref<1x32xf32, #tpu.memory_space<vmem>>, %arg8: memref<16x32xbf16, #tpu.memory_space<vmem>>) attributes {dimension_semantics = [#tpu.dimension_semantics<parallel>], iteration_bounds = array<i64: 2>, scalar_prefetch = 0 : i64, scratch_operands = 0 : i64, tpu.core_type = #tpu.core_type<tc>, window_params = [{transform_indices = @transform_0, window_bounds = array<i64: 16, 150>}, {pipeline_mode = #tpu.pipeline_mode<synchronous>, transform_indices = @transform_1, window_bounds = array<i64: 150, 39>}, {pipeline_mode = #tpu.pipeline_mode<synchronous>, transform_indices = @transform_2, window_bounds = array<i64: 1, 39>}, {pipeline_mode = #tpu.pipeline_mode<synchronous>, transform_indices = @transform_3, window_bounds = array<i64: 39, 8>}, {pipeline_mode = #tpu.pipeline_mode<synchronous>, transform_indices = @transform_4, window_bounds = array<i64: 1, 8>}, {pipeline_mode = #tpu.pipeline_mode<synchronous>, transform_indices = @transform_5, window_bounds = array<i64: 8, 32>}, {pipeline_mode = #tpu.pipeline_mode<synchronous>, transform_indices = @transform_6, window_bounds = array<i64: 1, 32>}, {transform_indices = @transform_7, window_bounds = array<i64: 16, 32>}]} {
    %c0 = arith.constant 0 : index
    %c0_0 = arith.constant 0 : index
    %0 = vector.load %arg1[%c0, %c0_0] : memref<16x150xbf16, #tpu.memory_space<vmem>>, vector<16x150xbf16>
    %c0_1 = arith.constant 0 : index
    %c0_2 = arith.constant 0 : index
    %1 = vector.load %arg2[%c0_1, %c0_2] : memref<150x39xbf16, #tpu.memory_space<vmem>>, vector<150x39xbf16>
    %cst = arith.constant dense<0.000000e+00> : vector<16x39xf32>
    %2 = tpu.matmul %0, %1, %cst {dimension_numbers = #tpu.dot_dimension_numbers<[1], [0], [0], [1], [0, 0, 1, 1], [], []>} : vector<16x150xbf16>, vector<150x39xbf16>, vector<16x39xf32> -> vector<16x39xf32>
    %c0_3 = arith.constant 0 : index
    %c0_4 = arith.constant 0 : index
    %3 = vector.load %arg3[%c0_3, %c0_4] : memref<1x39xf32, #tpu.memory_space<vmem>>, vector<1x39xf32>
    %4 = vector.broadcast %3 : vector<1x39xf32> to vector<16x39xf32>
    %5 = arith.addf %2, %4 : vector<16x39xf32>
    %cst_5 = arith.constant 0.000000e+00 : f32
    %6 = vector.broadcast %cst_5 : f32 to vector<16x39xf32>
    %7 = arith.maximumf %5, %6 : vector<16x39xf32>
    %8 = arith.truncf %7 : vector<16x39xf32> to vector<16x39xbf16>
    %c0_6 = arith.constant 0 : index
    %c0_7 = arith.constant 0 : index
    %9 = vector.load %arg4[%c0_6, %c0_7] : memref<39x8xbf16, #tpu.memory_space<vmem>>, vector<39x8xbf16>
    %cst_8 = arith.constant dense<0.000000e+00> : vector<16x8xf32>
    %10 = tpu.matmul %8, %9, %cst_8 {dimension_numbers = #tpu.dot_dimension_numbers<[1], [0], [0], [1], [0, 0, 1, 1], [], []>} : vector<16x39xbf16>, vector<39x8xbf16>, vector<16x8xf32> -> vector<16x8xf32>
    %c0_9 = arith.constant 0 : index
    %c0_10 = arith.constant 0 : index
    %11 = vector.load %arg5[%c0_9, %c0_10] : memref<1x8xf32, #tpu.memory_space<vmem>>, vector<1x8xf32>
    %12 = vector.broadcast %11 : vector<1x8xf32> to vector<16x8xf32>
    %13 = arith.addf %10, %12 : vector<16x8xf32>
    %cst_11 = arith.constant 0.000000e+00 : f32
    %14 = vector.broadcast %cst_11 : f32 to vector<16x8xf32>
    %15 = arith.maximumf %13, %14 : vector<16x8xf32>
    %16 = arith.truncf %15 : vector<16x8xf32> to vector<16x8xbf16>
    %c0_12 = arith.constant 0 : index
    %c0_13 = arith.constant 0 : index
    %17 = vector.load %arg6[%c0_12, %c0_13] : memref<8x32xbf16, #tpu.memory_space<vmem>>, vector<8x32xbf16>
    %cst_14 = arith.constant dense<0.000000e+00> : vector<16x32xf32>
    %18 = tpu.matmul %16, %17, %cst_14 {dimension_numbers = #tpu.dot_dimension_numbers<[1], [0], [0], [1], [0, 0, 1, 1], [], []>} : vector<16x8xbf16>, vector<8x32xbf16>, vector<16x32xf32> -> vector<16x32xf32>
    %c0_15 = arith.constant 0 : index
    %c0_16 = arith.constant 0 : index
    %19 = vector.load %arg7[%c0_15, %c0_16] : memref<1x32xf32, #tpu.memory_space<vmem>>, vector<1x32xf32>
    %20 = vector.broadcast %19 : vector<1x32xf32> to vector<16x32xf32>
    %21 = arith.addf %18, %20 : vector<16x32xf32>
    %22 = arith.truncf %21 : vector<16x32xf32> to vector<16x32xbf16>
    %c0_17 = arith.constant 0 : index
    %c0_18 = arith.constant 0 : index
    %23 = vector.load %arg8[%c0_17, %c0_18] : memref<16x32xbf16, #tpu.memory_space<vmem>>, vector<16x32xbf16>
    tpu.vector_store %arg8[%c0_17, %c0_18], %22 {strides = array<i32>} : memref<16x32xbf16, #tpu.memory_space<vmem>>, vector<16x32xbf16>,
    return
  }
  func.func @transform_0(%arg0: i32) -> (i32, i32) {
    %c0_i32 = arith.constant 0 : i32
    %c0_i32_0 = arith.constant 0 : i32
    return %arg0, %c0_i32 : i32, i32
  }
  func.func @transform_1(%arg0: i32) -> (i32, i32) {
    %c0_i32 = arith.constant 0 : i32
    %c0_i32_0 = arith.constant 0 : i32
    %c0_i32_1 = arith.constant 0 : i32
    return %c0_i32, %c0_i32_0 : i32, i32
  }
  func.func @transform_2(%arg0: i32) -> (i32, i32) {
    %c0_i32 = arith.constant 0 : i32
    %c0_i32_0 = arith.constant 0 : i32
    %c0_i32_1 = arith.constant 0 : i32
    return %c0_i32, %c0_i32_0 : i32, i32
  }
  func.func @transform_3(%arg0: i32) -> (i32, i32) {
    %c0_i32 = arith.constant 0 : i32
    %c0_i32_0 = arith.constant 0 : i32
    %c0_i32_1 = arith.constant 0 : i32
    return %c0_i32, %c0_i32_0 : i32, i32
  }
  func.func @transform_4(%arg0: i32) -> (i32, i32) {
    %c0_i32 = arith.constant 0 : i32
    %c0_i32_0 = arith.constant 0 : i32
    %c0_i32_1 = arith.constant 0 : i32
    return %c0_i32, %c0_i32_0 : i32, i32
  }
  func.func @transform_5(%arg0: i32) -> (i32, i32) {
    %c0_i32 = arith.constant 0 : i32
    %c0_i32_0 = arith.constant 0 : i32
    %c0_i32_1 = arith.constant 0 : i32
    return %c0_i32, %c0_i32_0 : i32, i32
  }
  func.func @transform_6(%arg0: i32) -> (i32, i32) {
    %c0_i32 = arith.constant 0 : i32
    %c0_i32_0 = arith.constant 0 : i32
    %c0_i32_1 = arith.constant 0 : i32
    return %c0_i32, %c0_i32_0 : i32, i32
  }
  func.func @transform_7(%arg0: i32) -> (i32, i32) {
    %c0_i32 = arith.constant 0 : i32
    %c0_i32_0 = arith.constant 0 : i32
    return %arg0, %c0_i32 : i32, i32
  }
}

</mosaic_0001>

<bundles_post_ra>
// kernel: tile.8
= control target key start
LH: loop header
LB: loop body
LE: loop exit
PB: predicated region body
PF: predicated region fallthrough
CT: control target
= control target key end

     0   :  { %s28_s0 = inlined_call_operand.vmem [shape: f32[4], index: 0, kind: input, shape index: {}]   ;;  %s29_s1 = inlined_call_operand.vmem [shape: f32[9,4], index: 1, kind: output, shape index: {}]  }
   0x1   :  { %v4_v0 = vld [vmem:[%s28_s0] ss:$0 sm:$0xff] }
   0x2   :  { %5 = vst [vmem:[%s29_s1] sm:$0xff] %v4_v0  ;;  %8 = vst [vmem:[%s29_s1 + $0x8] sm:$0xff] %v4_v0 }

// kernel: tile.9
= control target key start
LH: loop header
LB: loop body
LE: loop exit
PB: predicated region body
PF: predicated region fallthrough
CT: control target
= control target key end

     0   :  { %s77_s10 = smov 32   ;;  %s78_s11 = smov 24   ;;  %vm3_vm0 = vcmask 31744   ;;  %vm9_vm1 = vcmask 294144   ;;  %vm15_vm2 = vcmask 261344   ;;  %vm21_vm3 = vcmask 228544   ;;  %s125_s0 = inlined_call_operand.vmem [shape: f32[9,4], index: 0, kind: input, shape index: {}]   ;;  %s126_s1 = inlined_call_operand.vmem [shape: f32[36], index: 1, kind: output, shape index: {}]  }
   0x1   :  { %v61_v0 = vld [vmem:[%s125_s0 + $0x8] sm:$0x1]   ;;  %v63_v1 = vld [vmem:[%s125_s0 + $0x6] sm:$0x1]   ;;  %v62_v2 = vld [vmem:[%s125_s0 + $0x7] sm:$0x1]  }
   0x2   :  { %7 = vrot.lane.b32.xlu0 %v61_v0, %s77_s10  ;;  %19 = vrot.lane.b32.xlu1 %v63_v1, %s78_s11  ;;  %v64_v3 = vld [vmem:[%s125_s0 + $0x5] sm:$0x1]   ;;  %v2_v4 = vld [vmem:[%s125_s0] sm:$0x1]   ;;  %s79_s18 = smov 28   ;;  %s80_s19 = smov 20  }
   0x3   :  { %4 = vst.msk [vmem:[#allocation0] sm:$0x1] %vm3_vm0, %v2_v4   ;;  %v65_v5 = vld [vmem:[%s125_s0 + $0x4] sm:$0x1]   ;;  %v66_v6 = vld [vmem:[%s125_s0 + $0x3] sm:$0x1]  }
   0x4   :  { %s81_s24 = smov 16   ;;  %s82_s25 = smov 12   ;;  %v67_v7 = vld [vmem:[%s125_s0 + $0x2] sm:$0x1]   ;;  %v68_v8 = vld [vmem:[%s125_s0 + $0x1] sm:$0x1]  }
   0x5   :  { %s83_s0 = smov 8   ;;  %s84_s30 = smov 4   ;;  %vm27_vm4 = vcmask 195744   ;;  %vm33_vm5 = vcmask 162944   ;;  %vm39_vm6 = vcmask 130144   ;;  %vm45_vm7 = vcmask 97344  }
   0x6   :  { %13 = vrot.lane.b32.xlu0 %v62_v2, %s79_s18  ;;  %25 = vrot.lane.b32.xlu1 %v64_v3, %s80_s19  ;;  %vm51_vm8 = vcmask 64544  }
   0xa   :  { %31 = vrot.lane.b32.xlu0 %v65_v5, %s81_s24  ;;  %37 = vrot.lane.b32.xlu1 %v66_v6, %s82_s25 }
   0xe   :  { %43 = vrot.lane.b32.xlu0 %v67_v7, %s83_s0  ;;  %49 = vrot.lane.b32.xlu1 %v68_v8, %s84_s30 }
  0x74   :  { %v8_v9 = vpop.permute.xlu0 %7   ;;  %v20_v10 = vpop.permute.xlu1 %19  }
  0x75   :  { %10 = vst.msk [vmem:[#allocation0] sm:$0x1] %vm9_vm1, %v8_v9  }
  0x78   :  { %v14_v11 = vpop.permute.xlu0 %13   ;;  %v26_v12 = vpop.permute.xlu1 %25  }
  0x79   :  { %16 = vst.msk [vmem:[#allocation0] sm:$0x1] %vm15_vm2, %v14_v11  }
  0x7a   :  { %22 = vst.msk [vmem:[#allocation0] sm:$0x1] %vm21_vm3, %v20_v10  }
  0x7b   :  { %28 = vst.msk [vmem:[#allocation0] sm:$0x1] %vm27_vm4, %v26_v12  }
  0x7c   :  { %v32_v13 = vpop.permute.xlu0 %31   ;;  %v38_v14 = vpop.permute.xlu1 %37  }
  0x7d   :  { %34 = vst.msk [vmem:[#allocation0] sm:$0x1] %vm33_vm5, %v32_v13  }
  0x7e   :  { %40 = vst.msk [vmem:[#allocation0] sm:$0x1] %vm39_vm6, %v38_v14  }
  0x80   :  { %v44_v15 = vpop.permute.xlu0 %43   ;;  %v50_v16 = vpop.permute.xlu1 %49  }
  0x81   :  { %46 = vst.msk [vmem:[#allocation0] sm:$0x1] %vm45_vm7, %v44_v15  }
  0x82   :  { %52 = vst.msk [vmem:[#allocation0] sm:$0x1] %vm51_vm8, %v50_v16  }
  0x89   :  { %v57_v17 = vld [vmem:[#allocation0] sm:$0x1] }
  0x8a   :  { %60 = vst [vmem:[%s126_s1] sm:$0x1] %v57_v17 }

// kernel: conv_stem_forward.1
= control target key start
LH: loop header
LB: loop body
LE: loop exit
PB: predicated region body
PF: predicated region fallthrough
CT: control target
= control target key end

     0   :  { %12 = vsyncpa [#allocation3], 0  ;;  %s1040_s0 = inlined_call_operand.vmem [shape: bf16[32,150], index: 0, kind: input, shape index: {}]   ;;  %s1041_s1 = inlined_call_operand.vmem [shape: bf16[150,39], index: 1, kind: input, shape index: {}]   ;;  %s1042_s2 = inlined_call_operand.vmem [shape: f32[1,39], index: 2, kind: input, shape index: {}]   ;;  %s1043_s3 = inlined_call_operand.vmem [shape: bf16[39,8], index: 3, kind: input, shape index: {}]   ;;  %s1044_s4 = inlined_call_operand.vmem [shape: f32[1,8], index: 4, kind: input, shape index: {}]   ;;  %s1045_s5 = inlined_call_operand.vmem [shape: bf16[8,32], index: 5, kind: input, shape index: {}]   ;;  %s1046_s6 = inlined_call_operand.vmem [shape: f32[1,32], index: 6, kind: input, shape index: {}]   ;;  %s1047_s7 = inlined_call_operand.hbm [shape: bf16[32,32], index: 7, kind: output, shape index: {}]  }
   0x1   :  { %14 = vsyncpa [#allocation3 + $0x1], 0  ;;  %s886_s24 = smov 0   ;;  %s888_s25 = smov 0  }
   0x2   :  { %s890_s26 = smov 0   ;;  %s892_s27 = smov 0  }
   0x3 LB: > { %s907_s28 = sadd.s32 4294967295, %s837_s27   ;;  %s654_s29 = sadd.s32 4294967294, %s837_s27   ;;  %s837_s27 = sphi %s892_s27, %s1053_s27   ;;  %s833_s26 = sphi %s890_s26, %s1052_s26   ;;  %s829_s25 = sphi %s888_s25, %s1051_s25   ;;  %s825_s24 = sphi %s886_s24, %s1050_s24  }
   0x4   : > { %s911_s30 = sadd.s32 1, %s837_s27   ;;  %s179_s8 = sadd.s32 1, %s833_s26 }
   0x5   : > { %s176_s9 = ssub.s32 %s837_s27, %s911_s30  ;;  %p189_p0 = scmp.ne.s32.totalorder %s833_s26, %s829_s25 }
   0x6   : > { %p177_p1 = scmp.eq.s32.totalorder %s176_s9, 0  ;;  %p190_p2 = scmp.eq.s32.totalorder %s907_s28, 1 }
   0x7   : > { %p195_p3 = scmp.ne.s32.totalorder %s829_s25, %s825_s24  ;;  %p196_p4 = scmp.eq.s32.totalorder %s654_s29, 1 }
   0x8   : > { %s922_s10 = scalar_select %p177_p1, %s833_s26, %s179_s8  }
   0x9   : > { %p924_p5 = por %p190_p2, %p189_p0  ;;  %p928_p6 = por %p196_p4, %p195_p3 }
   0xa   : > { %p657_p7 = scmp.ge.s32.totalorder %s837_s27, 1  ;;  %p242_p8 = scmp.lt.s32.totalorder %s837_s27, 3 }
   0xc   : > { %p243_p9 = pnand %p657_p7, %p242_p8 }
   0xd   : > { %s659_s17 = sshll.u32 (!%p243_p9), %s907_s28, 1  ;;  %s272_s22 = sand.u32 (!%p243_p9), 1, %s829_s25  }
   0xe   : > { %246 = sbr.rel (%p243_p9) target bundleno = 681 (0x2a9), region = 48  ;;  %p276_p10 = scmp.lt.s32.totalorder (!%p243_p9), %s659_s17, 3 }
   0xf   : > { %s658_s9 = sshll.u32 (!%p243_p9), %s272_s22, 3  ;;  %s1000_s18 = scalar_lea.sflag (!%p243_p9), [#allocation3], %s272_s22 }
  0x10   : > { %s274_s13 = scalar_lea.vmem (!%p243_p9), [#allocation2], %s658_s9 }
  0x11   : > { %s592_s14 = sshll.u32 (!%p243_p9), %s274_s13, 4  ;;  %s993_s14 = int_to_ptr.vmem [resolvable:$true] %s592_s14 }
  0x12   : > { %s777_s19 = scalar_lea.vmem (!%p243_p9), %s993_s14, 128 }
  0x13   : > { %v761_v0 = vld [vmem:[%s1041_s1 + $0x38] sm:$0xff]   ;;  %v839_v1 = vmov 0   ;;  %v762_v2 = vld [vmem:[%s1041_s1 + $0x30] sm:$0xff]   ;;  %s1055_s17 = smov (!%p276_p10, %s659_s17), 3  ;;  %v763_v3 = vld [vmem:[%s1041_s1 + $0x28] sm:$0xff]   ;;  %v840_v4 = vmov 0.0   ;;  %p778_p11 = scmp.ne.s32.totalorder %s993_s14, %s777_s19 }
  0x14   : > { %386 = vmatprep.subr.bf16.mxu0 %v839_v1  ;;  %s690_s20 = sshll.u32 %s1055_s17, 3  ;;  %700 = vmatprep.subr.bf16.mxu1 %v840_v4  ;;  %vm378_vm0 = vcmask 179200   ;;  %v764_v5 = vld [vmem:[%s1041_s1 + $0x20] sm:$0xff]   ;;  %v765_v7 = vld [vmem:[%s1041_s1 + $0x18] sm:$0xff]   ;;  %v766_v8 = vld [vmem:[%s1041_s1 + $0x10] sm:$0xff]   ;;  %vm382_vm1 = vcmask 1042432  }
  0x15   : > { %387 = vmatpush1.bf16.msra.mxu0 %v761_v0  ;;  %s280_s23 = scalar_lea.vmem %s1040_s0, %s690_s20  ;;  %v767_v9 = vld [vmem:[%s1041_s1 + $0x8] sm:$0xff]   ;;  %v768_v10 = vld [vmem:[%s1041_s1] sm:$0xff]   ;;  %v774_v15 = vld [vmem:[%s1043_s3 + $0x10] ss:$0 sps:$4 sm:$0xff]   ;;  %vm461_vm2 = vcmask 1043456   ;;  %v841_v16 = vmov 65535   ;;  %p779_p12 = pnand %p778_p11, %p924_p5 }
  0x16   : > { %388 = vmatprep.subr.bf16.mxu0 %v839_v1  ;;  %v773_v6 = vld [vmem:[%s280_s23 + $0x4] ss:$8 sps:$4 sm:$0xff]   ;;  %v769_v11 = vld [vmem:[%s1041_s1 + $0x48] ss:$0 sps:$4 sm:$0x77]   ;;  %v462_v17 = vsel %vm382_vm1, 4294967295, %v841_v16 }
  0x17   : > { %675 = vmatprep.mubr.msk.bf16.mxu0 %vm378_vm0, %v773_v6  ;;  %v384_v12 = vsel %vm382_vm1, %v769_v11, 0  ;;  %v770_v13 = vld [vmem:[%s1041_s1 + $0x40] sm:$0xff]   ;;  %v463_v18 = vsel %vm461_vm2, %v462_v17, 0  ;;  %v775_v20 = vld [vmem:[%s1043_s3 + $0x8] sm:$0xff]   ;;  %vm842_vm3 = vmmov 0   ;;  %vm457_vm4 = vcmask 318464   ;;  %p780_p13 = pneg %p779_p12 }
  0x18   : > { %v771_v14 = vld [vmem:[%s280_s23] ss:$8 sps:$4 sm:$0xff]   ;;  %v465_v19 = vand.u32 %v774_v15, %v463_v18  ;;  %706 = vmatprep.mubr.msk.bf16.mxu1 %vm842_vm3, %v840_v4  ;;  %vm519_vm5 = vcmask 64512   ;;  %vm575_vm6 = vcmask 257024   ;;  %s693_s23 = sshll.u32 %s907_s28, 7  ;;  %s843_s28 = smov [#allocation2]  }
  0x19   : > { %389 = vmatpush1.bf16.msra.mxu0 %v762_v2  ;;  %v776_v21 = vld [vmem:[%s1043_s3] sm:$0xff]   ;;  %s998_s17 = scalar_lea.hbm %s1047_s7, %s693_s23  ;;  %s781_s20 = sshll.u32 %s843_s28, 4  ;;  %s782_s20 = int_to_ptr.vmem [resolvable:$false] %s781_s20 }
  0x1a   : > { %390 = vmatprep.subr.bf16.mxu0 %v839_v1  ;;  %701 = vmatpush3.bf16.msra.mxu1 %v465_v19  ;;  %v662_v22 = vld [vmem:[%s1042_s2] ss:$0 sm:$0xff]  ;;  %s783_s21 = scalar_lea.vmem %s782_s20, 256  ;;  %p784_p0 = scmp.lt.s32.totalorder %s993_s14, %s782_s20 }
  0x1b   : > { %702 = vmatprep.subr.bf16.mxu1 %v840_v4  ;;  %v511_v32 = vld [vmem:[%s1045_s5] sm:$0xf]  ;;  %p785_p1 = scmp.lt.s32.totalorder %s783_s21, %s777_s19 }
  0x1c   : > { %v524_v33 = vsel %vm461_vm2, %v511_v32, 0  ;;  %v676_v34 = vld [vmem:[%s1044_s4] ss:$0 sm:$0xff] }
  0x1d   : > { %391 = vmatpush1.bf16.msra.mxu0 %v763_v3  ;;  %v681_v44 = vld [vmem:[%s1046_s6] ss:$0 sm:$0xff]  ;;  %p786_p2 = por %p785_p1, %p784_p0 }
  0x1e   : > { %392 = vmatprep.subr.bf16.mxu0 %v839_v1  ;;  %703 = vmatpush3.bf16.msra.mxu1 %v775_v20 }
  0x1f   : > { %704 = vmatprep.subr.bf16.mxu1 %v840_v4  ;;  %p787_p3 = pnand %p786_p2, %p780_p13 }
  0x21   : > { %393 = vmatpush1.bf16.msra.mxu0 %v764_v5 }
  0x22   : > { %394 = vmatprep.subr.bf16.mxu0 %v839_v1  ;;  %705 = vmatpush3.bf16.msra.mxu1 %v776_v21 }
  0x23   : > { %710 = vmatprep.subr.bf16.mxu1 %v840_v4 }
  0x25   : > { %395 = vmatpush1.bf16.msra.mxu0 %v765_v7 }
  0x26   : > { %396 = vmatprep.subr.bf16.mxu0 %v839_v1 }
  0x29   : > { %397 = vmatpush1.bf16.msra.mxu0 %v766_v8 }
  0x2a   : > { %398 = vmatprep.subr.bf16.mxu0 %v839_v1 }
  0x2d   : > { %399 = vmatpush1.bf16.msra.mxu0 %v767_v9 }
  0x2e   : > { %400 = vmatprep.subr.bf16.mxu0 %v839_v1 }
  0x31   : > { %401 = vmatpush1.bf16.msra.mxu0 %v768_v10 }
  0x32   : > { %414 = vmatprep.subr.bf16.mxu0 %v839_v1 }
  0x35   : > { %415 = vmatpush2.bf16.msra.mxu0 %v384_v12 }
  0x36   : > { %416 = vmatprep.subr.bf16.mxu0 %v839_v1 }
  0x39   : > { %417 = vmatpush2.bf16.msra.mxu0 %v770_v13 }
  0x3c   : > { %419 = vmatmul.mubr.bf16.vlgmr.msra.gmra.mxu0 %v771_v14 }
  0xfc   : > { %v420_v23 = vpop.f32.mrf.mxu0 }
  0xfd   : > { %v421_v25 = vadd.f32 %v662_v22, %v420_v23 }
  0xfe   : > { %v422_v24 = vpop.f32.mrf.mxu0 }
  0xff   : > { %v427_v29 = vmax.f32 %v421_v25, 0.0 }
 0x100   : > { %v423_v26 = vpop.f32.mrf.mxu0 }
 0x101   : > { %v424_v27 = vadd.f32 %v662_v22, %v423_v26 }
 0x102   : > { %v425_v28 = vpop.f32.mrf.mxu0 }
 0x103   : > { %v428_v30 = vmax.f32 %v424_v27, 0.0 }
 0x105   : > { %v429_v31 = vpack.c.bf16 %v428_v30, %v427_v29 }
 0x107   : > { %707 = vmatmul.mubr.msk.bf16.vlgmr.msra.gmra.mxu1 %vm457_vm4, %v429_v31 }
 0x108   : > { %712 = vmatprep.mubr.msk.bf16.mxu1 %vm842_vm3, %v840_v4  ;;  %711 = vmatpush3.bf16.msra.mxu1 %v524_v33 }
 0x1c7   : > { %v501_v35 = vpop.f32.mrf.mxu1 }
 0x1c8   : > { %v502_v37 = vadd.f32 %v676_v34, %v501_v35 }
 0x1c9   : > { %v708_v36 = vpop.f32.mrf.mxu1 }
 0x1ca   : > { %v508_v41 = vmax.f32 %v502_v37, 0.0 }
 0x1cb   : > { %v504_v38 = vpop.f32.mrf.mxu1 }
 0x1cc   : > { %v505_v39 = vadd.f32 %v676_v34, %v504_v38 }
 0x1cd   : > { %v709_v40 = vpop.f32.mrf.mxu1 }
 0x1ce   : > { %v509_v42 = vmax.f32 %v505_v39, 0.0 }
 0x1d0   : > { %v510_v43 = vpack.c.bf16 %v509_v42, %v508_v41 }
 0x1d2   : > { %713 = vmatmul.mubr.msk.bf16.vlgmr.msra.gmra.mxu1 %vm519_vm5, %v510_v43 }
 0x292   : > { %v560_v45 = vpop.f32.mrf.mxu1 }
 0x293   : > { %v561_v46 = vadd.f32 %v681_v44, %v560_v45 }
 0x294   : > { %v714_v47 = vpop.f32.mrf.mxu1 }
 0x295   : > { %v691_v48 = vpack.c.bf16 %v561_v46, %v561_v46 }
 0x296   : > { %v563_v49 = vpop.f32.mrf.mxu1 }
 0x297   : > { %576 = vst.msk [vmem:[%s274_s13] sm:$0xf] %vm575_vm6, %v691_v48  ;;  %v564_v50 = vadd.f32 %v681_v44, %v563_v49 }
 0x298   : > { %v715_v51 = vpop.f32.mrf.mxu1 }
 0x299   : > { %v692_v52 = vpack.c.bf16 %v564_v50, %v564_v50 }
 0x29b   : > { %577 = vst.msk [vmem:[%s274_s13 + $0x4] sm:$0xf] %vm575_vm6, %v692_v52 }
 0x29c   : > { %790 = shalt.err (!%p787_p3)
}
 0x29d   : > { %s791_s22 = scalar_lea.hbm %s998_s17, 128  ;;  %s795_s9 = scalar_lea.hbm %s1047_s7, 256 }
 0x29e   : > { %p792_p4 = scmp.ne.s32.totalorder %s998_s17, %s791_s22  ;;  %p796_p9 = scmp.lt.s32.totalorder %s998_s17, %s1047_s7 }
 0x29f   : > { %p797_p10 = scmp.lt.s32.totalorder %s795_s9, %s791_s22 }
 0x2a0   : > { %p793_p7 = pnand %p792_p4, %p924_p5 }
 0x2a1   : > { %p798_p11 = por %p797_p10, %p796_p9 }
 0x2a2   : > { %p794_p8 = pneg %p793_p7 }
 0x2a4   : > { %p799_p12 = pnand %p798_p11, %p794_p8 }
 0x2a6   : > { %802 = shalt.err (!%p799_p12)
}
 0x2a7   : > { %s844_s15 = smov 64   ;;  %s845_s16 = smov 4  }
 0x2a8   : > { %716 = dma.vmem_to_hbm [thread:$0]  (%p924_p5), %s993_s14, 128, %s998_s17, %s1000_s18, %s844_s15, %s844_s15, %s845_s16  }
 0x2a9 PF: > { %p722_p13 = scmp.ge.s32.totalorder %s837_s27, 2  ;;  %s607_s19 = sand.u32 1, %s825_s24  }
 0x2aa   : > { %s608_s28 = scalar_lea.sflag [#allocation3], %s607_s19 }
 0x2ab   : > { %p719_p0 = pnand %p722_p13, %p928_p6 }
 0x2ad   : > { %p720_p1 = pneg %p719_p0 }
 0x2af   : > { %820 = dma.done.wait (%p720_p1), %s608_s28, 128  }
 0x2b0   : > { %822 = vsyncadd (%p720_p1), %s608_s28, 4294967168  ;;  %p17_p2 = scmp.ge.s32.totalorder %s911_s30, 4   ;;  %s1050_s24 = smov %s829_s25 }
 0x2b1   : > { %s1051_s25 = smov %s833_s26  ;;  %s1052_s26 = smov %s922_s10 }
 0x2b2   : > { %s1053_s27 = smov %s911_s30  ;;  %19 = sbr.rel (!%p17_p2) target bundleno = 3 (0x3), region = 83 }
 0x2b7   :  { %613 = vsyncpa [#allocation3], 1 }
 0x2b8   :  { %615 = vsyncpa [#allocation3 + $0x1], 1 }

</bundles_post_ra>
